<compile_context>
chip_gen: v7x
topology: tpu7x:2x2x1
jax: 0.10.0
libtpu: 0.0.40
codegen_flags: <defaults>
</compile_context>

<pallas_src>
import functools

import jax
import jax.numpy as jnp
from jax.experimental import pallas as pl
from jax.experimental.pallas import tpu as pltpu


# ---------------------------------------------------------------------------
# Kernels
# ---------------------------------------------------------------------------
def _mlp_block(x, w1_ref, b1_ref, w2_ref, b2_ref, matmul_dtype):
    """ReLU(ReLU(x @ W1 + b1) @ W2 + b2), f32 accumulate / elementwise."""
    h = jnp.dot(x.astype(matmul_dtype), w1_ref[...],
                preferred_element_type=jnp.float32)
    h = jnp.maximum(h + b1_ref[...], 0.0)          # (tm, H) + (1, H) broadcast
    h = jnp.dot(h.astype(matmul_dtype), w2_ref[...],
                preferred_element_type=jnp.float32)
    h = jnp.maximum(h + b2_ref[...], 0.0)
    return h


def _residual_kernel(msg_ref, clone_ref, w1_ref, b1_ref, w2_ref, b2_ref,
                     out_ref, *, matmul_dtype):
    h = _mlp_block(clone_ref[...], w1_ref, b1_ref, w2_ref, b2_ref,
                   matmul_dtype)
    # dropout (identity in eval mode) + residual add
    out_ref[...] = (msg_ref[...].astype(jnp.float32) + h).astype(out_ref.dtype)


def _residual_kernel_dedup(msg_ref, w1_ref, b1_ref, w2_ref, b2_ref, out_ref,
                           *, matmul_dtype):
    # message_clone is the same buffer as message: read the tile once.
    x = msg_ref[...]
    h = _mlp_block(x, w1_ref, b1_ref, w2_ref, b2_ref, matmul_dtype)
    out_ref[...] = (x.astype(jnp.float32) + h).astype(out_ref.dtype)


# ---------------------------------------------------------------------------
# Wrapper
# ---------------------------------------------------------------------------
def _round_up(x, m):
    return ((x + m - 1) // m) * m


def _pick_tm(N, H, in_itemsize, out_itemsize, n_in_row_streams,
             row_budget_bytes=12 * 1024 * 1024, tm_cap=2048):
    """Largest row tile that keeps double-buffered row streams under budget."""
    per_row = 2 * (n_in_row_streams * in_itemsize + out_itemsize) * H
    tm = row_budget_bytes // max(per_row, 1)
    tm = max(8, min(tm, tm_cap))
    tm = min(tm, _round_up(N, 8))        # no point tiling past (padded) N
    return max(8, (tm // 8) * 8)         # sublane-aligned


def residual_layer(message, message_clone, w1, b1, w2, b2, *,
                   tm=None, matmul_dtype=jnp.bfloat16, donate_message=False):
    """message, message_clone: (N, H).  w1, w2: (H, H) already transposed so
    that y = x @ w + b.  b1, b2: (H,)."""
    N, H = message.shape
    dedup = message_clone is message
    if not dedup:
        assert message_clone.shape == (N, H)
    assert w1.shape == (H, H) and w2.shape == (H, H)
    assert b1.shape == (H,) and b2.shape == (H,)

    # Weights stored/streamed in the matmul dtype; biases stay f32.
    w1 = w1.astype(matmul_dtype)
    w2 = w2.astype(matmul_dtype)
    b1 = b1.reshape(1, H).astype(jnp.float32)
    b2 = b2.reshape(1, H).astype(jnp.float32)

    n_in_row_streams = 1 if dedup else 2
    if tm is None:
        tm = _pick_tm(N, H, message.dtype.itemsize, message.dtype.itemsize,
                      n_in_row_streams)
    grid = (pl.cdiv(N, tm),)

    row_spec = pl.BlockSpec((tm, H), lambda i: (i, 0))
    w_spec = pl.BlockSpec((H, H), lambda i: (0, 0))
    b_spec = pl.BlockSpec((1, H), lambda i: (0, 0))

    if dedup:
        kernel = functools.partial(_residual_kernel_dedup,
                                   matmul_dtype=matmul_dtype)
        in_specs = [row_spec, w_spec, b_spec, w_spec, b_spec]
        args = (message, w1, b1, w2, b2)
    else:
        kernel = functools.partial(_residual_kernel,
                                   matmul_dtype=matmul_dtype)
        in_specs = [row_spec, row_spec, w_spec, b_spec, w_spec, b_spec]
        args = (message, message_clone, w1, b1, w2, b2)

    return pl.pallas_call(
        kernel,
        out_shape=jax.ShapeDtypeStruct((N, H), message.dtype),
        grid_spec=pl.GridSpec(grid=grid, in_specs=in_specs,
                              out_specs=row_spec),
        compiler_params=pltpu.CompilerParams(
            dimension_semantics=("parallel",),       # 2-TC split on v7x
            vmem_limit_bytes=32 * 1024 * 1024,       # > v5e 16 MiB default,
        ),                                           # < v7x 64 MiB physical
        input_output_aliases={0: 0} if donate_message else {},
    )(*args)


# ---------------------------------------------------------------------------
# Reference + demo
# ---------------------------------------------------------------------------
def _reference(message, message_clone, w1, b1, w2, b2):
    h = jnp.maximum(message_clone @ w1 + b1, 0.0)
    h = jnp.maximum(h @ w2 + b2, 0.0)
    return message + h


if __name__ == "__main__":
    key = jax.random.PRNGKey(0)
    N, H = 16, 32  # N messages (edges), hidden_channels = 32

    k_msg, k_clone, k_w1, k_b1, k_w2, k_b2 = jax.random.split(key, 6)

    message = jax.random.normal(k_msg, (N, H), dtype=jnp.float32)
    message_clone = jax.random.normal(k_clone, (N, H), dtype=jnp.float32)

    # Deterministic "nn.Linear"-style init (Kaiming-uniform-ish), pre-transposed
    # to (H_in, H_out).
    bound = 1.0 / (H ** 0.5)
    w1 = jax.random.uniform(k_w1, (H, H), jnp.float32, -bound, bound)
    b1 = jax.random.uniform(k_b1, (H,), jnp.float32, -bound, bound)
    w2 = jax.random.uniform(k_w2, (H, H), jnp.float32, -bound, bound)
    b2 = jax.random.uniform(k_b2, (H,), jnp.float32, -bound, bound)

    ref = _reference(message, message_clone, w1, b1, w2, b2)

    # 1) Exact f32 path (bit-faithful to the PyTorch eval-mode forward).
    out_f32 = residual_layer(message, message_clone, w1, b1, w2, b2,
                             matmul_dtype=jnp.float32)
    out_f32 = jax.block_until_ready(out_f32)
    assert out_f32.shape == (N, H)
    assert jnp.allclose(out_f32, ref, atol=1e-5, rtol=1e-5)

    # 2) Default fast path: bf16 matmul inputs, f32 accumulate/elementwise.
    out_bf16 = residual_layer(message, message_clone, w1, b1, w2, b2)
    out_bf16 = jax.block_until_ready(out_bf16)
    assert jnp.allclose(out_bf16, ref, atol=5e-2, rtol=5e-2)

    # 3) Deduplicated path (message_clone is the same array as message, the
    #    usual DMPNN call pattern) — one (N, H) HBM input stream instead of 2.
    ref_same = _reference(message, message, w1, b1, w2, b2)
    out_same = residual_layer(message, message, w1, b1, w2, b2,
                              matmul_dtype=jnp.float32)
    out_same = jax.block_until_ready(out_same)
    assert jnp.allclose(out_same, ref_same, atol=1e-5, rtol=1e-5)

    print("KERNEL_OK")
</pallas_src>

<mosaic_0001>
module attributes {stable_mosaic.version = 11 : i64} {
  func.func @_residual_kernel(%arg0: i32, %arg1: memref<16x32xf32, #tpu.memory_space<vmem>>, %arg2: memref<16x32xf32, #tpu.memory_space<vmem>>, %arg3: memref<32x32xf32, #tpu.memory_space<vmem>>, %arg4: memref<1x32xf32, #tpu.memory_space<vmem>>, %arg5: memref<32x32xf32, #tpu.memory_space<vmem>>, %arg6: memref<1x32xf32, #tpu.memory_space<vmem>>, %arg7: memref<16x32xf32, #tpu.memory_space<vmem>>) attributes {dimension_semantics = [#tpu.dimension_semantics<parallel>], iteration_bounds = array<i64: 1>, scalar_prefetch = 0 : i64, scratch_operands = 0 : i64, tpu.core_type = #tpu.core_type<tc>, window_params = [{transform_indices = @transform_0, window_bounds = array<i64: 16, 32>}, {transform_indices = @transform_1, window_bounds = array<i64: 16, 32>}, {pipeline_mode = #tpu.pipeline_mode<synchronous>, transform_indices = @transform_2, window_bounds = array<i64: 32, 32>}, {pipeline_mode = #tpu.pipeline_mode<synchronous>, transform_indices = @transform_3, window_bounds = array<i64: 1, 32>}, {pipeline_mode = #tpu.pipeline_mode<synchronous>, transform_indices = @transform_4, window_bounds = array<i64: 32, 32>}, {pipeline_mode = #tpu.pipeline_mode<synchronous>, transform_indices = @transform_5, window_bounds = array<i64: 1, 32>}, {transform_indices = @transform_6, window_bounds = array<i64: 16, 32>}]} {
    %c0 = arith.constant 0 : index
    %c0_0 = arith.constant 0 : index
    %0 = vector.load %arg2[%c0, %c0_0] : memref<16x32xf32, #tpu.memory_space<vmem>>, vector<16x32xf32>
    %c0_1 = arith.constant 0 : index
    %c0_2 = arith.constant 0 : index
    %1 = vector.load %arg3[%c0_1, %c0_2] : memref<32x32xf32, #tpu.memory_space<vmem>>, vector<32x32xf32>
    %cst = arith.constant dense<0.000000e+00> : vector<16x32xf32>
    %2 = tpu.matmul %0, %1, %cst {dimension_numbers = #tpu.dot_dimension_numbers<[1], [0], [0], [1], [0, 0, 1, 1], [], []>} : vector<16x32xf32>, vector<32x32xf32>, vector<16x32xf32> -> vector<16x32xf32>
    %c0_3 = arith.constant 0 : index
    %c0_4 = arith.constant 0 : index
    %3 = vector.load %arg4[%c0_3, %c0_4] : memref<1x32xf32, #tpu.memory_space<vmem>>, vector<1x32xf32>
    %4 = vector.broadcast %3 : vector<1x32xf32> to vector<16x32xf32>
    %5 = arith.addf %2, %4 : vector<16x32xf32>
    %cst_5 = arith.constant 0.000000e+00 : f32
    %6 = vector.broadcast %cst_5 : f32 to vector<16x32xf32>
    %7 = arith.maximumf %5, %6 : vector<16x32xf32>
    %c0_6 = arith.constant 0 : index
    %c0_7 = arith.constant 0 : index
    %8 = vector.load %arg5[%c0_6, %c0_7] : memref<32x32xf32, #tpu.memory_space<vmem>>, vector<32x32xf32>
    %cst_8 = arith.constant dense<0.000000e+00> : vector<16x32xf32>
    %9 = tpu.matmul %7, %8, %cst_8 {dimension_numbers = #tpu.dot_dimension_numbers<[1], [0], [0], [1], [0, 0, 1, 1], [], []>} : vector<16x32xf32>, vector<32x32xf32>, vector<16x32xf32> -> vector<16x32xf32>
    %c0_9 = arith.constant 0 : index
    %c0_10 = arith.constant 0 : index
    %10 = vector.load %arg6[%c0_9, %c0_10] : memref<1x32xf32, #tpu.memory_space<vmem>>, vector<1x32xf32>
    %11 = vector.broadcast %10 : vector<1x32xf32> to vector<16x32xf32>
    %12 = arith.addf %9, %11 : vector<16x32xf32>
    %cst_11 = arith.constant 0.000000e+00 : f32
    %13 = vector.broadcast %cst_11 : f32 to vector<16x32xf32>
    %14 = arith.maximumf %12, %13 : vector<16x32xf32>
    %c0_12 = arith.constant 0 : index
    %c0_13 = arith.constant 0 : index
    %15 = vector.load %arg1[%c0_12, %c0_13] : memref<16x32xf32, #tpu.memory_space<vmem>>, vector<16x32xf32>
    %16 = arith.addf %15, %14 : vector<16x32xf32>
    %c0_14 = arith.constant 0 : index
    %c0_15 = arith.constant 0 : index
    %17 = vector.load %arg7[%c0_14, %c0_15] : memref<16x32xf32, #tpu.memory_space<vmem>>, vector<16x32xf32>
    tpu.vector_store %arg7[%c0_14, %c0_15], %16 {strides = array<i32>} : memref<16x32xf32, #tpu.memory_space<vmem>>, vector<16x32xf32>,
    return
  }
  func.func @transform_0(%arg0: i32) -> (i32, i32) {
    %c0_i32 = arith.constant 0 : i32
    %c0_i32_0 = arith.constant 0 : i32
    return %arg0, %c0_i32 : i32, i32
  }
  func.func @transform_1(%arg0: i32) -> (i32, i32) {
    %c0_i32 = arith.constant 0 : i32
    %c0_i32_0 = arith.constant 0 : i32
    return %arg0, %c0_i32 : i32, i32
  }
  func.func @transform_2(%arg0: i32) -> (i32, i32) {
    %c0_i32 = arith.constant 0 : i32
    %c0_i32_0 = arith.constant 0 : i32
    %c0_i32_1 = arith.constant 0 : i32
    return %c0_i32, %c0_i32_0 : i32, i32
  }
  func.func @transform_3(%arg0: i32) -> (i32, i32) {
    %c0_i32 = arith.constant 0 : i32
    %c0_i32_0 = arith.constant 0 : i32
    %c0_i32_1 = arith.constant 0 : i32
    return %c0_i32, %c0_i32_0 : i32, i32
  }
  func.func @transform_4(%arg0: i32) -> (i32, i32) {
    %c0_i32 = arith.constant 0 : i32
    %c0_i32_0 = arith.constant 0 : i32
    %c0_i32_1 = arith.constant 0 : i32
    return %c0_i32, %c0_i32_0 : i32, i32
  }
  func.func @transform_5(%arg0: i32) -> (i32, i32) {
    %c0_i32 = arith.constant 0 : i32
    %c0_i32_0 = arith.constant 0 : i32
    %c0_i32_1 = arith.constant 0 : i32
    return %c0_i32, %c0_i32_0 : i32, i32
  }
  func.func @transform_6(%arg0: i32) -> (i32, i32) {
    %c0_i32 = arith.constant 0 : i32
    %c0_i32_0 = arith.constant 0 : i32
    return %arg0, %c0_i32 : i32, i32
  }
}

</mosaic_0001>

<bundles_post_ra>
// kernel: tpu_custom_call.1
= control target key start
LH: loop header
LB: loop body
LE: loop exit
PB: predicated region body
PF: predicated region fallthrough
CT: control target
= control target key end

     0   :  { %11 = vsyncpa [#allocation3], 0  ;;  %s619_s0 = inlined_call_operand.hbm [shape: f32[16,32], index: 0, kind: input, shape index: {}]   ;;  %s620_s1 = inlined_call_operand.hbm [shape: f32[16,32], index: 1, kind: input, shape index: {}]   ;;  %s621_s2 = inlined_call_operand.hbm [shape: f32[32,32], index: 2, kind: input, shape index: {}]   ;;  %s622_s3 = inlined_call_operand.vmem [shape: f32[1,32], index: 3, kind: input, shape index: {}]   ;;  %s623_s4 = inlined_call_operand.hbm [shape: f32[32,32], index: 4, kind: input, shape index: {}]   ;;  %s624_s5 = inlined_call_operand.vmem [shape: f32[1,32], index: 5, kind: input, shape index: {}]   ;;  %s625_s6 = inlined_call_operand.hbm [shape: f32[16,32], index: 6, kind: output, shape index: {}]  }
   0x1   :  { %12 = vsyncpa [#allocation6], 0 }
   0x2   :  { %13 = vsyncpa [#allocation9], 0 }
   0x3   :  { %14 = vsyncpa [#allocation4], 0  ;;  %s476_s21 = smov [#allocation5]   ;;  %s477_s23 = smov [#allocation2]  }
   0x4   :  { %s32_s22 = sshll.u32 %s476_s21, 4  ;;  %s20_s24 = sshll.u32 %s477_s23, 4  ;;  %s33_s22 = int_to_ptr.vmem [resolvable:$true] %s32_s22  ;;  %s518_s24 = int_to_ptr.vmem [resolvable:$true] %s20_s24 }
   0x5   :  { %s358_s27 = scalar_lea.hbm %s620_s1, 256 }
   0x6   :  { %p359_p0 = scmp.ne.s32.totalorder %s620_s1, %s358_s27  ;;  %p362_p1 = scmp.lt.u32.totalorder %s358_s27, %s620_s1 }
   0x8   :  { %p364_p2 = pnand %p362_p1, %p359_p0 }
   0xa   :  { %367 = shalt.err (!%p364_p2)
}
   0xb   :  { %s368_s8 = scalar_lea.vmem %s33_s22, 256  ;;  %p373_p4 = scmp.lt.s32.totalorder %s33_s22, %s33_s22 }
   0xc   :  { %p369_p3 = scmp.ne.s32.totalorder %s33_s22, %s368_s8  ;;  %p374_p5 = scmp.lt.s32.totalorder %s368_s8, %s368_s8 }
   0xe   :  { %p375_p6 = por %p374_p5, %p373_p4 }
  0x10   :  { %p376_p7 = pnand %p375_p6, %p369_p3 }
  0x12   :  { %379 = shalt.err (!%p376_p7)
}
  0x13   :  { %s478_s9 = smov 128   ;;  %s479_s10 = smov 8  }
  0x14   :  { %38 = dma.hbm_to_vmem [thread:$0]  %s620_s1, 256, %s33_s22, [#allocation6], %s478_s9, %s478_s9, %s479_s10  }
  0x15   :  { %s380_s15 = scalar_lea.hbm %s619_s0, 256 }
  0x16   :  { %p381_p8 = scmp.ne.s32.totalorder %s619_s0, %s380_s15  ;;  %p384_p9 = scmp.lt.u32.totalorder %s380_s15, %s619_s0 }
  0x18   :  { %p386_p10 = pnand %p384_p9, %p381_p8 }
  0x1a   :  { %389 = shalt.err (!%p386_p10)
}
  0x1b   :  { %s390_s20 = scalar_lea.vmem %s518_s24, 256  ;;  %p395_p12 = scmp.lt.s32.totalorder %s518_s24, %s518_s24 }
  0x1c   :  { %p391_p11 = scmp.ne.s32.totalorder %s518_s24, %s390_s20  ;;  %p396_p13 = scmp.lt.s32.totalorder %s390_s20, %s390_s20 }
  0x1e   :  { %p397_p0 = por %p396_p13, %p395_p12 }
  0x20   :  { %p398_p1 = pnand %p397_p0, %p391_p11 }
  0x22   :  { %401 = shalt.err (!%p398_p1)
}
  0x23   :  { %26 = dma.hbm_to_vmem [thread:$0]  %s619_s0, 256, %s518_s24, [#allocation3], %s478_s9, %s478_s9, %s479_s10  }
  0x24   :  { %s480_s22 = smov [#allocation7]   ;;  %s481_s25 = smov [#allocation8]  }
  0x25   :  { %s44_s23 = sshll.u32 %s480_s22, 4  ;;  %s58_s26 = sshll.u32 %s481_s25, 4  ;;  %s45_s23 = int_to_ptr.vmem [resolvable:$true] %s44_s23  ;;  %s555_s26 = int_to_ptr.vmem [resolvable:$true] %s58_s26 }
  0x26   :  { %s402_s29 = scalar_lea.hbm %s621_s2, 512 }
  0x27   :  { %p403_p2 = scmp.ne.s32.totalorder %s621_s2, %s402_s29  ;;  %p406_p3 = scmp.lt.u32.totalorder %s402_s29, %s621_s2 }
  0x29   :  { %p408_p4 = pnand %p406_p3, %p403_p2 }
  0x2b   :  { %411 = shalt.err (!%p408_p4)
}
  0x2c   :  { %s412_s0 = scalar_lea.vmem %s45_s23, 512  ;;  %p417_p6 = scmp.lt.s32.totalorder %s45_s23, %s45_s23 }
  0x2d   :  { %p413_p5 = scmp.ne.s32.totalorder %s45_s23, %s412_s0  ;;  %p418_p7 = scmp.lt.s32.totalorder %s412_s0, %s412_s0 }
  0x2f   :  { %p419_p8 = por %p418_p7, %p417_p6 }
  0x31   :  { %p420_p9 = pnand %p419_p8, %p413_p5 }
  0x33   :  { %423 = shalt.err (!%p420_p9)
}
  0x34   :  { %50 = dma.hbm_to_vmem [thread:$0]  %s621_s2, 512, %s45_s23, [#allocation6], %s478_s9, %s478_s9, %s479_s10  }
  0x35   :  { %s424_s15 = scalar_lea.hbm %s623_s4, 512 }
  0x36   :  { %p425_p10 = scmp.ne.s32.totalorder %s623_s4, %s424_s15  ;;  %p428_p11 = scmp.lt.u32.totalorder %s424_s15, %s623_s4 }
  0x38   :  { %p430_p12 = pnand %p428_p11, %p425_p10 }
  0x3a   :  { %433 = shalt.err (!%p430_p12)
}
  0x3b   :  { %s434_s20 = scalar_lea.vmem %s555_s26, 512  ;;  %p439_p0 = scmp.lt.s32.totalorder %s555_s26, %s555_s26 }
  0x3c   :  { %p435_p13 = scmp.ne.s32.totalorder %s555_s26, %s434_s20  ;;  %p440_p1 = scmp.lt.s32.totalorder %s434_s20, %s434_s20 }
  0x3e   :  { %p441_p2 = por %p440_p1, %p439_p0 }
  0x40   :  { %p442_p3 = pnand %p441_p2, %p435_p13 }
  0x42   :  { %445 = shalt.err (!%p442_p3)
}
  0x43   :  { %64 = dma.hbm_to_vmem [thread:$0]  %s623_s4, 512, %s555_s26, [#allocation9], %s478_s9, %s478_s9, %s479_s10  }
  0x44   :  { %468 = dma.done.wait [#allocation3], 256  }
  0x45   :  { %469 = vsyncadd [#allocation3], 4294967040 }
  0x46   :  { %470 = dma.done.wait [#allocation6], 768  }
  0x47   :  { %471 = vsyncadd [#allocation6], 4294966528 }
  0x48   :  { %472 = dma.done.wait [#allocation9], 512  }
  0x49   :  { %473 = vsyncadd [#allocation9], 4294966784  ;;  %vm92_vm0 = vcmask 261120   ;;  %v81_v0 = vld [vmem:[#allocation7] sm:$0xff]  ;;  %v82_v1 = vld [vmem:[#allocation7 + $0x8] sm:$0xff] }
  0x4a   :  { %v83_v2 = vld [vmem:[#allocation7 + $0x10] sm:$0xff]  ;;  %v335_v3 = vpack.c.bf16 %v82_v1, %v81_v0  ;;  %v84_v4 = vld [vmem:[#allocation7 + $0x18] sm:$0xff]  ;;  %v176_v7 = vld [vmem:[#allocation8] sm:$0xff] }
  0x4b   :  { %v79_v5 = vld [vmem:[#allocation5] sm:$0xff]  ;;  %v339_v6 = vpack.c.bf16 %v84_v4, %v83_v2  ;;  %v177_v8 = vld [vmem:[#allocation8 + $0x8] sm:$0xff]  ;;  %v80_v10 = vld [vmem:[#allocation5 + $0x8] sm:$0xff] }
  0x4c   :  { %321 = vmatprep.mubr.msk.f32.mxu0 %vm92_vm0, %v79_v5  ;;  %336 = vmatprep.subr.bf16.mxu0 %v335_v3  ;;  %v343_v9 = vpack.c.bf16 %v177_v8, %v176_v7  ;;  %v178_v11 = vld [vmem:[#allocation8 + $0x10] sm:$0xff]  ;;  %v179_v12 = vld [vmem:[#allocation8 + $0x18] sm:$0xff]  ;;  %v295_v14 = vld [vmem:[%s622_s3] ss:$0 sm:$0xff]  ;;  %s482_s3 = smov [#allocation10]  }
  0x4d   :  { %338 = vmatpush3.bf16.msra.mxu0 %v335_v3  ;;  %v347_v13 = vpack.c.bf16 %v179_v12, %v178_v11  ;;  %v298_v21 = vld [vmem:[%s624_s5] ss:$0 sm:$0xff]  ;;  %v271_v25 = vld [vmem:[#allocation2 + $0x8] sm:$0xff]  ;;  %s281_s25 = sshll.u32 %s482_s3, 4  ;;  %s282_s25 = int_to_ptr.vmem [resolvable:$true] %s281_s25 }
  0x4e   :  { %340 = vmatprep.subr.bf16.mxu0 %v339_v6  ;;  %344 = vmatprep.subr.bf16.mxu1 %v343_v9  ;;  %v270_v28 = vld [vmem:[#allocation2] sm:$0xff]  ;;  %s446_s26 = scalar_lea.vmem %s282_s25, 256  ;;  %p451_p5 = scmp.lt.s32.totalorder %s282_s25, %s282_s25 }
  0x4f   :  { %346 = vmatpush3.bf16.msra.mxu1 %v343_v9  ;;  %p447_p4 = scmp.ne.s32.totalorder %s282_s25, %s446_s26  ;;  %p452_p6 = scmp.lt.s32.totalorder %s446_s26, %s446_s26 }
  0x50   :  { %348 = vmatprep.subr.bf16.mxu1 %v347_v13 }
  0x51   :  { %342 = vmatpush3.bf16.msra.mxu0 %v339_v6  ;;  %p453_p7 = por %p452_p6, %p451_p5 }
  0x53   :  { %350 = vmatpush3.bf16.msra.mxu1 %v347_v13  ;;  %p454_p8 = pnand %p453_p7, %p447_p4 }
  0x54   :  { %322 = vmatmul.mubr.msk.f32.vlgmr.msra.gmra.mrb[0].mxu0 %vm92_vm0, %v80_v10 }
 0x127   :  { %v323_v15 = vpop.f32.mrb[0].mxu0 }
 0x128   :  { %v171_v16 = vadd.f32 %v323_v15, %v295_v14  ;;  %v165_v17 = vpop.f32.mrb[1].mxu0 }
 0x129   :  { %v166_v18 = vadd.f32 %v295_v14, %v165_v17 }
 0x12a   :  { %v175_v20 = vmax.f32 %v171_v16, 0.0 }
 0x12b   :  { %v174_v19 = vmax.f32 %v166_v18, 0.0 }
 0x12d   :  { %332 = vmatprep.mubr.msk.f32.mxu1 %vm92_vm0, %v174_v19 }
 0x12e   :  { %333 = vmatmul.mubr.msk.f32.vlgmr.msra.gmra.mrb[0].mxu1 %vm92_vm0, %v175_v20 }
 0x201   :  { %v334_v22 = vpop.f32.mrb[0].mxu1 }
 0x202   :  { %v265_v23 = vadd.f32 %v334_v22, %v298_v21  ;;  %v259_v24 = vpop.f32.mrb[1].mxu1 }
 0x203   :  { %v260_v26 = vadd.f32 %v298_v21, %v259_v24 }
 0x204   :  { %v269_v27 = vmax.f32 %v265_v23, 0.0 }
 0x205   :  { %v268_v29 = vmax.f32 %v260_v26, 0.0 }
 0x206   :  { %v273_v30 = vadd.f32 %v271_v25, %v269_v27 }
 0x207   :  { %v272_v31 = vadd.f32 %v270_v28, %v268_v29 }
 0x208   :  { %275 = vst.msk [vmem:[#allocation10 + $0x8] sm:$0xff] %vm92_vm0, %v273_v30 }
 0x209   :  { %274 = vst.msk [vmem:[#allocation10] sm:$0xff] %vm92_vm0, %v272_v31 }
 0x20a   :  { %457 = shalt.err (!%p454_p8)
}
 0x20b   :  { %s458_s28 = scalar_lea.hbm %s625_s6, 256 }
 0x20c   :  { %p459_p9 = scmp.ne.s32.totalorder %s625_s6, %s458_s28  ;;  %p462_p10 = scmp.lt.u32.totalorder %s458_s28, %s625_s6 }
 0x20e   :  { %p464_p11 = pnand %p462_p10, %p459_p9 }
 0x210   :  { %467 = shalt.err (!%p464_p11)
}
 0x211   :  { %287 = dma.vmem_to_hbm [thread:$0]  %s282_s25, 256, %s625_s6, [#allocation4], %s478_s9, %s478_s9, %s479_s10  }
 0x212   :  { %474 = dma.done.wait [#allocation4], 256  }
 0x213   :  { %475 = vsyncadd [#allocation4], 4294967040 }
 0x214   :  { %291 = vsyncpa [#allocation3], 1 }
 0x215   :  { %292 = vsyncpa [#allocation6], 1 }
 0x216   :  { %293 = vsyncpa [#allocation9], 1 }
 0x217   :  { %294 = vsyncpa [#allocation4], 1 }

</bundles_post_ra>
